<compile_context>
chip_gen: v6e
topology: v6e:2x2x1
jax: 0.10.0
libtpu: 0.0.40
codegen_flags: <defaults>
</compile_context>

<pallas_src>
import functools
import math

import jax
import jax.numpy as jnp
from jax.experimental import pallas as pl
from jax.experimental.pallas import tpu as pltpu


# ------------------------------ tiling helpers ------------------------------

def _round_up(x, m):
    return ((x + m - 1) // m) * m


def _pick_tile(dim, target, align):
    """Largest tile <= target that is a multiple of `align` and divides `dim`;
    falls back to the full dimension (always a legal BlockSpec block)."""
    if dim <= target:
        return dim
    t = (target // align) * align
    while t >= align:
        if dim % t == 0:
            return t
        t -= align
    return dim


# ------------------------------ Pallas kernels ------------------------------

def _ln_matmul_kernel(x_ref, g_ref, b_ref, w_ref, o_ref):
    """LayerNorm(x_tile) @ W_tile  (LN is a cheap VPU prologue on the A tile)."""
    x = x_ref[...].astype(jnp.float32)
    mu = jnp.mean(x, axis=-1, keepdims=True)
    xc = x - mu
    var = jnp.mean(xc * xc, axis=-1, keepdims=True)
    h = xc * jax.lax.rsqrt(var + 1e-5) * g_ref[...] + b_ref[...]
    o_ref[...] = jnp.dot(h, w_ref[...],
                         preferred_element_type=jnp.float32).astype(o_ref.dtype)


def _ln_router_kernel(x_ref, g_ref, b_ref, w_ref, h_ref, y_ref):
    """LayerNorm(x_tile); emits both the normalized tile and the router logits."""
    x = x_ref[...].astype(jnp.float32)
    mu = jnp.mean(x, axis=-1, keepdims=True)
    xc = x - mu
    var = jnp.mean(xc * xc, axis=-1, keepdims=True)
    h = xc * jax.lax.rsqrt(var + 1e-5) * g_ref[...] + b_ref[...]
    h_ref[...] = h.astype(h_ref.dtype)
    y_ref[...] = jnp.dot(h, w_ref[...],
                         preferred_element_type=jnp.float32).astype(y_ref.dtype)


def _proj_residual_kernel(a_ref, w_ref, r_ref, o_ref):
    """o = residual + a @ W  (fused output projection + residual add)."""
    o_ref[...] = (r_ref[...] +
                  jnp.dot(a_ref[...], w_ref[...],
                          preferred_element_type=jnp.float32)).astype(o_ref.dtype)


def _attn_kernel(q_ref, k_ref, v_ref, o_ref, *, scale):
    """Softmax attention for one (batch, head) block."""
    q = q_ref[0].astype(jnp.float32)                        # (T, dk)
    k = k_ref[0].astype(jnp.float32)
    v = v_ref[0].astype(jnp.float32)
    s = jnp.dot(q, k.T, preferred_element_type=jnp.float32) * scale
    # TODO(synk): optional attention mask (mask==0 -> -1e9) not wired; mask=None path.
    m = jnp.max(s, axis=-1, keepdims=True)
    p = jnp.exp(s - m)
    l = jnp.sum(p, axis=-1, keepdims=True)
    out = jnp.dot(p, v, preferred_element_type=jnp.float32)
    o_ref[0] = (out * pl.reciprocal(l, approx=True)).astype(o_ref.dtype)


def _moe_group_kernel(te_ref, x_ref, w1_ref, w3_ref, w2_ref, o_ref, acc_ref):
    """Grouped expert GEMM: one row tile (all rows routed to the same expert),
    one d_ff tile; accumulates the down-projection across d_ff tiles."""
    f = pl.program_id(1)

    @pl.when(f == 0)
    def _():
        acc_ref[...] = jnp.zeros_like(acc_ref)

    x = x_ref[...]                     # (tm, D)
    w1 = w1_ref[0]                     # (D, tf)
    w3 = w3_ref[0]                     # (D, tf)
    w2 = w2_ref[0]                     # (tf, D)

    gate = jnp.dot(x, w1, preferred_element_type=jnp.float32)
    gate = gate * jax.nn.sigmoid(gate)                        # SiLU
    up = jnp.dot(x, w3, preferred_element_type=jnp.float32)
    acc_ref[...] += jnp.dot(gate * up, w2, preferred_element_type=jnp.float32)

    @pl.when(f == pl.num_programs(1) - 1)
    def _():
        o_ref[...] = acc_ref[...].astype(o_ref.dtype)


# ------------------------------ Pallas wrappers ------------------------------

def ln_matmul(x, gamma, beta, w, *, tm_target=256, tn_target=512):
    M, D = x.shape
    OUT = w.shape[1]
    tm = _pick_tile(M, tm_target, 8)
    tn = _pick_tile(OUT, tn_target, 128)
    return pl.pallas_call(
        _ln_matmul_kernel,
        out_shape=jax.ShapeDtypeStruct((M, OUT), jnp.float32),
        grid=(M // tm, OUT // tn),
        in_specs=[pl.BlockSpec((tm, D), lambda i, j: (i, 0)),
                  pl.BlockSpec((1, D), lambda i, j: (0, 0)),
                  pl.BlockSpec((1, D), lambda i, j: (0, 0)),
                  pl.BlockSpec((D, tn), lambda i, j: (0, j))],
        out_specs=pl.BlockSpec((tm, tn), lambda i, j: (i, j)),
        compiler_params=pltpu.CompilerParams(
            dimension_semantics=("parallel", "parallel"),
            vmem_limit_bytes=64 * 1024 * 1024),
    )(x, gamma.reshape(1, D), beta.reshape(1, D), w)


def ln_router(x, gamma, beta, w_router, *, tm_target=256):
    M, D = x.shape
    E = w_router.shape[1]
    tm = _pick_tile(M, tm_target, 8)
    return pl.pallas_call(
        _ln_router_kernel,
        out_shape=(jax.ShapeDtypeStruct((M, D), jnp.float32),
                   jax.ShapeDtypeStruct((M, E), jnp.float32)),
        grid=(M // tm,),
        in_specs=[pl.BlockSpec((tm, D), lambda i: (i, 0)),
                  pl.BlockSpec((1, D), lambda i: (0, 0)),
                  pl.BlockSpec((1, D), lambda i: (0, 0)),
                  pl.BlockSpec((D, E), lambda i: (0, 0))],
        out_specs=(pl.BlockSpec((tm, D), lambda i: (i, 0)),
                   pl.BlockSpec((tm, E), lambda i: (i, 0))),
        compiler_params=pltpu.CompilerParams(
            dimension_semantics=("parallel",)),
    )(x, gamma.reshape(1, D), beta.reshape(1, D), w_router)


def proj_residual(a, w, res, *, tm_target=256, tn_target=512):
    M, D_in = a.shape
    D_out = w.shape[1]
    tm = _pick_tile(M, tm_target, 8)
    tn = _pick_tile(D_out, tn_target, 128)
    return pl.pallas_call(
        _proj_residual_kernel,
        out_shape=jax.ShapeDtypeStruct((M, D_out), jnp.float32),
        grid=(M // tm, D_out // tn),
        in_specs=[pl.BlockSpec((tm, D_in), lambda i, j: (i, 0)),
                  pl.BlockSpec((D_in, tn), lambda i, j: (0, j)),
                  pl.BlockSpec((tm, tn), lambda i, j: (i, j))],
        out_specs=pl.BlockSpec((tm, tn), lambda i, j: (i, j)),
        compiler_params=pltpu.CompilerParams(
            dimension_semantics=("parallel", "parallel"),
            vmem_limit_bytes=64 * 1024 * 1024),
    )(a, w, res)


def attention_core(q, k, v, scale):
    BH, T, dk = q.shape
    # TODO(synk): for long T switch to a flash-style (BH, T//tq, T//tk) grid with
    #             online-softmax m/l/acc scratch; full-T blocks are fine here.
    return pl.pallas_call(
        functools.partial(_attn_kernel, scale=scale),
        out_shape=jax.ShapeDtypeStruct((BH, T, dk), jnp.float32),
        grid=(BH,),
        in_specs=[pl.BlockSpec((1, T, dk), lambda i: (i, 0, 0)),
                  pl.BlockSpec((1, T, dk), lambda i: (i, 0, 0)),
                  pl.BlockSpec((1, T, dk), lambda i: (i, 0, 0))],
        out_specs=pl.BlockSpec((1, T, dk), lambda i: (i, 0, 0)),
        compiler_params=pltpu.CompilerParams(
            dimension_semantics=("parallel",)),
    )(q, k, v)


def moe_grouped(h2, w1, w3, w2, topk_idx, topk_probs, *, residual,
                tm_target=256, tf_target=512):
    """Token-group routed MoE.  Sorts (token, expert) assignments by expert,
    pads each group to the row-tile size, runs a grouped GEMM with a scalar-
    prefetched per-tile expert id, then scatter-adds the weighted expert
    outputs onto `residual`."""
    N, D = h2.shape
    E, _, DFF = w1.shape
    K = topk_idx.shape[-1]
    A = N * K                                       # routed (token, expert) pairs

    # --- static tile sizes ---
    tm = min(tm_target, max(8, _round_up(max(1, A // E), 8)))
    tf = _pick_tile(DFF, tf_target, 128)
    M_pad = _round_up(A, tm) + E * tm               # static upper bound, mult. of tm
    num_tiles = M_pad // tm
    num_f = DFF // tf

    # --- routing metadata (plain-JAX glue: sort / gather / scatter) ---
    expert_assign = topk_idx.reshape(-1).astype(jnp.int32)            # (A,)
    token_ids = jnp.repeat(jnp.arange(N, dtype=jnp.int32), K)         # (A,)
    combine_w = topk_probs.reshape(-1).astype(jnp.float32)            # (A,)

    order = jnp.argsort(expert_assign, stable=True)
    sorted_expert = expert_assign[order]
    sorted_token = token_ids[order]
    sorted_w = combine_w[order]

    counts = jnp.sum(jax.nn.one_hot(expert_assign, E, dtype=jnp.int32), axis=0)
    padded_counts = ((counts + tm - 1) // tm) * tm
    raw_starts = jnp.concatenate(
        [jnp.zeros((1,), jnp.int32), jnp.cumsum(counts)[:-1].astype(jnp.int32)])
    padded_starts = jnp.concatenate(
        [jnp.zeros((1,), jnp.int32), jnp.cumsum(padded_counts)[:-1].astype(jnp.int32)])

    j = jnp.arange(A, dtype=jnp.int32)
    dest = padded_starts[sorted_expert] + (j - raw_starts[sorted_expert])

    x_sorted = jnp.zeros((M_pad, D), h2.dtype).at[dest].set(h2[sorted_token])
    w_sorted = jnp.zeros((M_pad,), jnp.float32).at[dest].set(sorted_w)
    tok_sorted = jnp.zeros((M_pad,), jnp.int32).at[dest].set(sorted_token)

    cum_padded = jnp.cumsum(padded_counts).astype(jnp.int32)          # (E,)
    tile_starts = jnp.arange(num_tiles, dtype=jnp.int32) * tm
    tile_expert = jnp.searchsorted(cum_padded, tile_starts, side="right")
    tile_expert = jnp.minimum(tile_expert, E - 1).astype(jnp.int32)   # (num_tiles,)

    # --- grouped GEMM kernel ---
    grid_spec = pltpu.PrefetchScalarGridSpec(
        num_scalar_prefetch=1,
        grid=(num_tiles, num_f),
        in_specs=[
            pl.BlockSpec((tm, D), lambda t, f, te: (t, 0)),
            pl.BlockSpec((1, D, tf), lambda t, f, te: (te[t], 0, f)),
            pl.BlockSpec((1, D, tf), lambda t, f, te: (te[t], 0, f)),
            pl.BlockSpec((1, tf, D), lambda t, f, te: (te[t], f, 0)),
        ],
        out_specs=pl.BlockSpec((tm, D), lambda t, f, te: (t, 0)),
        scratch_shapes=[pltpu.VMEM((tm, D), jnp.float32)],
    )
    y_sorted = pl.pallas_call(
        _moe_group_kernel,
        out_shape=jax.ShapeDtypeStruct((M_pad, D), jnp.float32),
        grid_spec=grid_spec,
        compiler_params=pltpu.CompilerParams(
            dimension_semantics=("arbitrary", "arbitrary"),
            vmem_limit_bytes=64 * 1024 * 1024),
    )(tile_expert, x_sorted, w1, w3, w2)

    # combine weights + residual add via scatter-add (padding rows have weight 0).
    contrib = y_sorted * w_sorted[:, None]
    return residual.at[tok_sorted].add(contrib)


# --------------------------------- JAX glue ----------------------------------

def rope_freqs(T, dk, base=10000.0):
    inv_freq = 1.0 / (base ** (jnp.arange(0, dk, 2, dtype=jnp.float32) / dk))
    t = jnp.arange(T, dtype=jnp.float32)
    return jnp.outer(t, inv_freq)                            # (T, dk//2)


def apply_rope(x, freqs):
    # x: (B, H, T, dk), interleaved even/odd pairing — matches the PyTorch ref.
    # TODO(synk): fuse into the attention kernel with pltpu.roll to avoid the
    #             stride-2 slicing / stack relayouts between pallas_calls.
    x1 = x[..., 0::2]
    x2 = x[..., 1::2]
    cos = jnp.cos(freqs)[None, None, :, :]
    sin = jnp.sin(freqs)[None, None, :, :]
    o1 = x1 * cos - x2 * sin
    o2 = x1 * sin + x2 * cos
    return jnp.stack([o1, o2], axis=-1).reshape(x.shape)


def wm2_transformer_block(x, params, *, n_heads, top_k, lb_coef=0.01):
    B, T, D = x.shape
    dk = D // n_heads
    N = B * T
    x_flat = x.reshape(N, D)

    # ------------------ attention sub-layer (pre-norm) ------------------
    qkv = ln_matmul(x_flat, params["norm1_g"], params["norm1_b"], params["attn_w"])
    qkv = qkv.reshape(B, T, 3, n_heads, dk)
    q = qkv[:, :, 0].transpose(0, 2, 1, 3)                   # (B, H, T, dk)
    k = qkv[:, :, 1].transpose(0, 2, 1, 3)
    v = qkv[:, :, 2].transpose(0, 2, 1, 3)

    freqs = rope_freqs(T, dk)
    q = apply_rope(q, freqs)
    k = apply_rope(k, freqs)

    scale = 1.0 / math.sqrt(dk)
    attn = attention_core(q.reshape(B * n_heads, T, dk),
                          k.reshape(B * n_heads, T, dk),
                          v.reshape(B * n_heads, T, dk), scale)
    attn = attn.reshape(B, n_heads, T, dk).transpose(0, 2, 1, 3).reshape(N, D)
    x_flat = proj_residual(attn, params["out_proj_w"], x_flat)   # out_proj + residual

    # --------------------- MoE sub-layer (pre-norm) ---------------------
    h2, router_logits = ln_router(x_flat, params["norm2_g"], params["norm2_b"],
                                  params["router_w"])
    E = router_logits.shape[-1]
    topk_logits, topk_idx = jax.lax.top_k(router_logits, top_k)
    topk_probs = jax.nn.softmax(topk_logits, axis=-1)

    x_flat = moe_grouped(h2, params["w1"], params["w3"], params["w2"],
                         topk_idx, topk_probs, residual=x_flat)

    # load-balance aux loss (tiny reduction, plain-JAX glue; matches the ref)
    router_probs = jax.nn.softmax(router_logits, axis=-1)
    expert_probs = jnp.mean(router_probs, axis=0)
    balance_loss = lb_coef * E * jnp.sum(expert_probs * expert_probs)

    return x_flat.reshape(B, T, D), balance_loss


def init_params(key, d_model, n_experts, d_ff):
    ks = jax.random.split(key, 6)
    s = 0.02

    def w(k, shape):
        return s * jax.random.normal(k, shape, jnp.float32)

    return dict(
        norm1_g=jnp.ones((d_model,), jnp.float32),
        norm1_b=jnp.zeros((d_model,), jnp.float32),
        norm2_g=jnp.ones((d_model,), jnp.float32),
        norm2_b=jnp.zeros((d_model,), jnp.float32),
        attn_w=w(ks[0], (d_model, 3 * d_model)),       # qkv projection (pre-transposed)
        out_proj_w=w(ks[1], (d_model, d_model)),
        router_w=w(ks[2], (d_model, n_experts)),
        w1=w(ks[3], (n_experts, d_model, d_ff)),       # gate proj
        w3=w(ks[4], (n_experts, d_model, d_ff)),       # up proj
        w2=w(ks[5], (n_experts, d_ff, d_model)),       # down proj
    )


if __name__ == "__main__":
    B, T, D = 2, 8, 32
    H, E, TOPK, DFF = 4, 4, 2, 64

    key = jax.random.PRNGKey(0)
    kx, kp = jax.random.split(key)
    x = jax.random.normal(kx, (B, T, D), jnp.float32)
    params = init_params(kp, D, E, DFF)

    fwd = jax.jit(functools.partial(wm2_transformer_block, n_heads=H, top_k=TOPK))
    out, balance_loss = fwd(x, params)
    jax.block_until_ready((out, balance_loss))
    assert out.shape == (B, T, D)
    assert balance_loss.shape == ()
    print("KERNEL_OK")
</pallas_src>

<mosaic_0001>
module attributes {stable_mosaic.version = 11 : i64} {
  func.func @_ln_matmul_kernel(%arg0: i32, %arg1: i32, %arg2: memref<16x32xf32, #tpu.memory_space<vmem>>, %arg3: memref<1x32xf32, #tpu.memory_space<vmem>>, %arg4: memref<1x32xf32, #tpu.memory_space<vmem>>, %arg5: memref<32x96xf32, #tpu.memory_space<vmem>>, %arg6: memref<16x96xf32, #tpu.memory_space<vmem>>) attributes {dimension_semantics = [#tpu.dimension_semantics<parallel>, #tpu.dimension_semantics<parallel>], iteration_bounds = array<i64: 1, 1>, scalar_prefetch = 0 : i64, scratch_operands = 0 : i64, tpu.core_type = #tpu.core_type<tc>, window_params = [{transform_indices = @transform_0, window_bounds = array<i64: 16, 32>}, {pipeline_mode = #tpu.pipeline_mode<synchronous>, transform_indices = @transform_1, window_bounds = array<i64: 1, 32>}, {pipeline_mode = #tpu.pipeline_mode<synchronous>, transform_indices = @transform_2, window_bounds = array<i64: 1, 32>}, {transform_indices = @transform_3, window_bounds = array<i64: 32, 96>}, {transform_indices = @transform_4, window_bounds = array<i64: 16, 96>}]} {
    %c0 = arith.constant 0 : index
    %c0_0 = arith.constant 0 : index
    %0 = vector.load %arg2[%c0, %c0_0] : memref<16x32xf32, #tpu.memory_space<vmem>>, vector<16x32xf32>
    %cst = arith.constant dense<0.000000e+00> : vector<16xf32>
    %1 = vector.multi_reduction <add>, %0, %cst [1] : vector<16x32xf32> to vector<16xf32>
    %2 = vector.shape_cast %1 : vector<16xf32> to vector<16x1xf32>
    %cst_1 = arith.constant 3.200000e+01 : f32
    %3 = vector.broadcast %cst_1 : f32 to vector<16x1xf32>
    %4 = arith.divf %2, %3 : vector<16x1xf32>
    %5 = vector.broadcast %4 : vector<16x1xf32> to vector<16x32xf32>
    %6 = arith.subf %0, %5 : vector<16x32xf32>
    %7 = arith.mulf %6, %6 : vector<16x32xf32>
    %cst_2 = arith.constant dense<0.000000e+00> : vector<16xf32>
    %8 = vector.multi_reduction <add>, %7, %cst_2 [1] : vector<16x32xf32> to vector<16xf32>
    %9 = vector.shape_cast %8 : vector<16xf32> to vector<16x1xf32>
    %cst_3 = arith.constant 3.200000e+01 : f32
    %10 = vector.broadcast %cst_3 : f32 to vector<16x1xf32>
    %11 = arith.divf %9, %10 : vector<16x1xf32>
    %cst_4 = arith.constant 9.99999974E-6 : f32
    %12 = vector.broadcast %cst_4 : f32 to vector<16x1xf32>
    %13 = arith.addf %11, %12 : vector<16x1xf32>
    %14 = math.rsqrt %13 : vector<16x1xf32>
    %15 = vector.broadcast %14 : vector<16x1xf32> to vector<16x32xf32>
    %16 = arith.mulf %6, %15 : vector<16x32xf32>
    %c0_5 = arith.constant 0 : index
    %c0_6 = arith.constant 0 : index
    %17 = vector.load %arg3[%c0_5, %c0_6] : memref<1x32xf32, #tpu.memory_space<vmem>>, vector<1x32xf32>
    %18 = vector.broadcast %17 : vector<1x32xf32> to vector<16x32xf32>
    %19 = arith.mulf %16, %18 : vector<16x32xf32>
    %c0_7 = arith.constant 0 : index
    %c0_8 = arith.constant 0 : index
    %20 = vector.load %arg4[%c0_7, %c0_8] : memref<1x32xf32, #tpu.memory_space<vmem>>, vector<1x32xf32>
    %21 = vector.broadcast %20 : vector<1x32xf32> to vector<16x32xf32>
    %22 = arith.addf %19, %21 : vector<16x32xf32>
    %c0_9 = arith.constant 0 : index
    %c0_10 = arith.constant 0 : index
    %23 = vector.load %arg5[%c0_9, %c0_10] : memref<32x96xf32, #tpu.memory_space<vmem>>, vector<32x96xf32>
    %cst_11 = arith.constant dense<0.000000e+00> : vector<16x96xf32>
    %24 = tpu.matmul %22, %23, %cst_11 {dimension_numbers = #tpu.dot_dimension_numbers<[1], [0], [0], [1], [0, 0, 1, 1], [], []>} : vector<16x32xf32>, vector<32x96xf32>, vector<16x96xf32> -> vector<16x96xf32>
    %c0_12 = arith.constant 0 : index
    %c0_13 = arith.constant 0 : index
    %25 = vector.load %arg6[%c0_12, %c0_13] : memref<16x96xf32, #tpu.memory_space<vmem>>, vector<16x96xf32>
    tpu.vector_store %arg6[%c0_12, %c0_13], %24 {strides = array<i32>} : memref<16x96xf32, #tpu.memory_space<vmem>>, vector<16x96xf32>,
    return
  }
  func.func @transform_0(%arg0: i32, %arg1: i32) -> (i32, i32) {
    %c0_i32 = arith.constant 0 : i32
    %c0_i32_0 = arith.constant 0 : i32
    return %arg0, %c0_i32 : i32, i32
  }
  func.func @transform_1(%arg0: i32, %arg1: i32) -> (i32, i32) {
    %c0_i32 = arith.constant 0 : i32
    %c0_i32_0 = arith.constant 0 : i32
    %c0_i32_1 = arith.constant 0 : i32
    return %c0_i32, %c0_i32_0 : i32, i32
  }
  func.func @transform_2(%arg0: i32, %arg1: i32) -> (i32, i32) {
    %c0_i32 = arith.constant 0 : i32
    %c0_i32_0 = arith.constant 0 : i32
    %c0_i32_1 = arith.constant 0 : i32
    return %c0_i32, %c0_i32_0 : i32, i32
  }
  func.func @transform_3(%arg0: i32, %arg1: i32) -> (i32, i32) {
    %c0_i32 = arith.constant 0 : i32
    %c0_i32_0 = arith.constant 0 : i32
    return %c0_i32, %arg1 : i32, i32
  }
  func.func @transform_4(%arg0: i32, %arg1: i32) -> (i32, i32) {
    %c0_i32 = arith.constant 0 : i32
    return %arg0, %arg1 : i32, i32
  }
}

module attributes {stable_mosaic.version = 11 : i64} {
  func.func @_attn_kernel(%arg0: i32, %arg1: memref<1x8x8xf32, #tpu.memory_space<vmem>>, %arg2: memref<1x8x8xf32, #tpu.memory_space<vmem>>, %arg3: memref<1x8x8xf32, #tpu.memory_space<vmem>>, %arg4: memref<1x8x8xf32, #tpu.memory_space<vmem>>) attributes {dimension_semantics = [#tpu.dimension_semantics<parallel>], iteration_bounds = array<i64: 8>, scalar_prefetch = 0 : i64, scratch_operands = 0 : i64, tpu.core_type = #tpu.core_type<tc>, window_params = [{transform_indices = @transform_0, window_bounds = array<i64: 1, 8, 8>}, {transform_indices = @transform_1, window_bounds = array<i64: 1, 8, 8>}, {transform_indices = @transform_2, window_bounds = array<i64: 1, 8, 8>}, {transform_indices = @transform_3, window_bounds = array<i64: 1, 8, 8>}]} {
    %c0 = arith.constant 0 : index
    %c0_0 = arith.constant 0 : index
    %c0_1 = arith.constant 0 : index
    %0 = vector.load %arg1[%c0, %c0_0, %c0_1] : memref<1x8x8xf32, #tpu.memory_space<vmem>>, vector<1x8x8xf32>
    %1 = vector.shape_cast %0 : vector<1x8x8xf32> to vector<8x8xf32>
    %c0_2 = arith.constant 0 : index
    %c0_3 = arith.constant 0 : index
    %c0_4 = arith.constant 0 : index
    %2 = vector.load %arg2[%c0_2, %c0_3, %c0_4] : memref<1x8x8xf32, #tpu.memory_space<vmem>>, vector<1x8x8xf32>
    %3 = vector.shape_cast %2 : vector<1x8x8xf32> to vector<8x8xf32>
    %c0_5 = arith.constant 0 : index
    %c0_6 = arith.constant 0 : index
    %c0_7 = arith.constant 0 : index
    %4 = vector.load %arg3[%c0_5, %c0_6, %c0_7] : memref<1x8x8xf32, #tpu.memory_space<vmem>>, vector<1x8x8xf32>
    %5 = vector.shape_cast %4 : vector<1x8x8xf32> to vector<8x8xf32>
    %6 = tpu.transpose %3, [1, 0] : vector<8x8xf32> -> vector<8x8xf32>
    %cst = arith.constant dense<0.000000e+00> : vector<8x8xf32>
    %7 = tpu.matmul %1, %6, %cst {dimension_numbers = #tpu.dot_dimension_numbers<[1], [0], [0], [1], [0, 0, 1, 1], [], []>} : vector<8x8xf32>, vector<8x8xf32>, vector<8x8xf32> -> vector<8x8xf32>
    %cst_8 = arith.constant 0.353553385 : f32
    %8 = vector.broadcast %cst_8 : f32 to vector<8x8xf32>
    %9 = arith.mulf %7, %8 : vector<8x8xf32>
    %cst_9 = arith.constant dense<0xFF800000> : vector<8xf32>
    %10 = vector.multi_reduction <maximumf>, %9, %cst_9 [1] : vector<8x8xf32> to vector<8xf32>
    %11 = vector.shape_cast %10 : vector<8xf32> to vector<8x1xf32>
    %12 = vector.broadcast %11 : vector<8x1xf32> to vector<8x8xf32>
    %13 = arith.subf %9, %12 : vector<8x8xf32>
    %14 = math.exp %13 : vector<8x8xf32>
    %cst_10 = arith.constant dense<0.000000e+00> : vector<8xf32>
    %15 = vector.multi_reduction <add>, %14, %cst_10 [1] : vector<8x8xf32> to vector<8xf32>
    %16 = vector.shape_cast %15 : vector<8xf32> to vector<8x1xf32>
    %cst_11 = arith.constant dense<0.000000e+00> : vector<8x8xf32>
    %17 = tpu.matmul %14, %5, %cst_11 {dimension_numbers = #tpu.dot_dimension_numbers<[1], [0], [0], [1], [0, 0, 1, 1], [], []>} : vector<8x8xf32>, vector<8x8xf32>, vector<8x8xf32> -> vector<8x8xf32>
    %18 = tpu.reciprocal %16 {approx = true} : vector<8x1xf32> -> vector<8x1xf32>
    %19 = vector.broadcast %18 : vector<8x1xf32> to vector<8x8xf32>
    %20 = arith.mulf %17, %19 : vector<8x8xf32>
    %c0_12 = arith.constant 0 : index
    %c0_13 = arith.constant 0 : index
    %c0_14 = arith.constant 0 : index
    %21 = vector.load %arg4[%c0_12, %c0_13, %c0_14] : memref<1x8x8xf32, #tpu.memory_space<vmem>>, vector<1x8x8xf32>
    %22 = vector.shape_cast %21 : vector<1x8x8xf32> to vector<8x8xf32>
    %23 = vector.shape_cast %20 : vector<8x8xf32> to vector<1x8x8xf32>
    tpu.vector_store %arg4[%c0_12, %c0_13, %c0_14], %23 {strides = array<i32>} : memref<1x8x8xf32, #tpu.memory_space<vmem>>, vector<1x8x8xf32>,
    return
  }
  func.func @transform_0(%arg0: i32) -> (i32, i32, i32) {
    %c0_i32 = arith.constant 0 : i32
    %c0_i32_0 = arith.constant 0 : i32
    %c0_i32_1 = arith.constant 0 : i32
    return %arg0, %c0_i32, %c0_i32_0 : i32, i32, i32
  }
  func.func @transform_1(%arg0: i32) -> (i32, i32, i32) {
    %c0_i32 = arith.constant 0 : i32
    %c0_i32_0 = arith.constant 0 : i32
    %c0_i32_1 = arith.constant 0 : i32
    return %arg0, %c0_i32, %c0_i32_0 : i32, i32, i32
  }
  func.func @transform_2(%arg0: i32) -> (i32, i32, i32) {
    %c0_i32 = arith.constant 0 : i32
    %c0_i32_0 = arith.constant 0 : i32
    %c0_i32_1 = arith.constant 0 : i32
    return %arg0, %c0_i32, %c0_i32_0 : i32, i32, i32
  }
  func.func @transform_3(%arg0: i32) -> (i32, i32, i32) {
    %c0_i32 = arith.constant 0 : i32
    %c0_i32_0 = arith.constant 0 : i32
    %c0_i32_1 = arith.constant 0 : i32
    return %arg0, %c0_i32, %c0_i32_0 : i32, i32, i32
  }
}

module attributes {stable_mosaic.version = 11 : i64} {
  func.func @_proj_residual_kernel(%arg0: i32, %arg1: i32, %arg2: memref<16x32xf32, #tpu.memory_space<vmem>>, %arg3: memref<32x32xf32, #tpu.memory_space<vmem>>, %arg4: memref<16x32xf32, #tpu.memory_space<vmem>>, %arg5: memref<16x32xf32, #tpu.memory_space<vmem>>) attributes {dimension_semantics = [#tpu.dimension_semantics<parallel>, #tpu.dimension_semantics<parallel>], iteration_bounds = array<i64: 1, 1>, scalar_prefetch = 0 : i64, scratch_operands = 0 : i64, tpu.core_type = #tpu.core_type<tc>, window_params = [{transform_indices = @transform_0, window_bounds = array<i64: 16, 32>}, {transform_indices = @transform_1, window_bounds = array<i64: 32, 32>}, {transform_indices = @transform_2, window_bounds = array<i64: 16, 32>}, {transform_indices = @transform_3, window_bounds = array<i64: 16, 32>}]} {
    %c0 = arith.constant 0 : index
    %c0_0 = arith.constant 0 : index
    %0 = vector.load %arg4[%c0, %c0_0] : memref<16x32xf32, #tpu.memory_space<vmem>>, vector<16x32xf32>
    %c0_1 = arith.constant 0 : index
    %c0_2 = arith.constant 0 : index
    %1 = vector.load %arg2[%c0_1, %c0_2] : memref<16x32xf32, #tpu.memory_space<vmem>>, vector<16x32xf32>
    %c0_3 = arith.constant 0 : index
    %c0_4 = arith.constant 0 : index
    %2 = vector.load %arg3[%c0_3, %c0_4] : memref<32x32xf32, #tpu.memory_space<vmem>>, vector<32x32xf32>
    %cst = arith.constant dense<0.000000e+00> : vector<16x32xf32>
    %3 = tpu.matmul %1, %2, %cst {dimension_numbers = #tpu.dot_dimension_numbers<[1], [0], [0], [1], [0, 0, 1, 1], [], []>} : vector<16x32xf32>, vector<32x32xf32>, vector<16x32xf32> -> vector<16x32xf32>
    %4 = arith.addf %0, %3 : vector<16x32xf32>
    %c0_5 = arith.constant 0 : index
    %c0_6 = arith.constant 0 : index
    %5 = vector.load %arg5[%c0_5, %c0_6] : memref<16x32xf32, #tpu.memory_space<vmem>>, vector<16x32xf32>
    tpu.vector_store %arg5[%c0_5, %c0_6], %4 {strides = array<i32>} : memref<16x32xf32, #tpu.memory_space<vmem>>, vector<16x32xf32>,
    return
  }
  func.func @transform_0(%arg0: i32, %arg1: i32) -> (i32, i32) {
    %c0_i32 = arith.constant 0 : i32
    %c0_i32_0 = arith.constant 0 : i32
    return %arg0, %c0_i32 : i32, i32
  }
  func.func @transform_1(%arg0: i32, %arg1: i32) -> (i32, i32) {
    %c0_i32 = arith.constant 0 : i32
    %c0_i32_0 = arith.constant 0 : i32
    return %c0_i32, %arg1 : i32, i32
  }
  func.func @transform_2(%arg0: i32, %arg1: i32) -> (i32, i32) {
    %c0_i32 = arith.constant 0 : i32
    return %arg0, %arg1 : i32, i32
  }
  func.func @transform_3(%arg0: i32, %arg1: i32) -> (i32, i32) {
    %c0_i32 = arith.constant 0 : i32
    return %arg0, %arg1 : i32, i32
  }
}

module attributes {stable_mosaic.version = 11 : i64} {
  func.func @_ln_router_kernel(%arg0: i32, %arg1: memref<16x32xf32, #tpu.memory_space<vmem>>, %arg2: memref<1x32xf32, #tpu.memory_space<vmem>>, %arg3: memref<1x32xf32, #tpu.memory_space<vmem>>, %arg4: memref<32x4xf32, #tpu.memory_space<vmem>>, %arg5: memref<16x32xf32, #tpu.memory_space<vmem>>, %arg6: memref<16x4xf32, #tpu.memory_space<vmem>>) attributes {dimension_semantics = [#tpu.dimension_semantics<parallel>], iteration_bounds = array<i64: 1>, scalar_prefetch = 0 : i64, scratch_operands = 0 : i64, tpu.core_type = #tpu.core_type<tc>, window_params = [{transform_indices = @transform_0, window_bounds = array<i64: 16, 32>}, {pipeline_mode = #tpu.pipeline_mode<synchronous>, transform_indices = @transform_1, window_bounds = array<i64: 1, 32>}, {pipeline_mode = #tpu.pipeline_mode<synchronous>, transform_indices = @transform_2, window_bounds = array<i64: 1, 32>}, {pipeline_mode = #tpu.pipeline_mode<synchronous>, transform_indices = @transform_3, window_bounds = array<i64: 32, 4>}, {transform_indices = @transform_4, window_bounds = array<i64: 16, 32>}, {transform_indices = @transform_5, window_bounds = array<i64: 16, 4>}]} {
    %c0 = arith.constant 0 : index
    %c0_0 = arith.constant 0 : index
    %0 = vector.load %arg1[%c0, %c0_0] : memref<16x32xf32, #tpu.memory_space<vmem>>, vector<16x32xf32>
    %cst = arith.constant dense<0.000000e+00> : vector<16xf32>
    %1 = vector.multi_reduction <add>, %0, %cst [1] : vector<16x32xf32> to vector<16xf32>
    %2 = vector.shape_cast %1 : vector<16xf32> to vector<16x1xf32>
    %cst_1 = arith.constant 3.200000e+01 : f32
    %3 = vector.broadcast %cst_1 : f32 to vector<16x1xf32>
    %4 = arith.divf %2, %3 : vector<16x1xf32>
    %5 = vector.broadcast %4 : vector<16x1xf32> to vector<16x32xf32>
    %6 = arith.subf %0, %5 : vector<16x32xf32>
    %7 = arith.mulf %6, %6 : vector<16x32xf32>
    %cst_2 = arith.constant dense<0.000000e+00> : vector<16xf32>
    %8 = vector.multi_reduction <add>, %7, %cst_2 [1] : vector<16x32xf32> to vector<16xf32>
    %9 = vector.shape_cast %8 : vector<16xf32> to vector<16x1xf32>
    %cst_3 = arith.constant 3.200000e+01 : f32
    %10 = vector.broadcast %cst_3 : f32 to vector<16x1xf32>
    %11 = arith.divf %9, %10 : vector<16x1xf32>
    %cst_4 = arith.constant 9.99999974E-6 : f32
    %12 = vector.broadcast %cst_4 : f32 to vector<16x1xf32>
    %13 = arith.addf %11, %12 : vector<16x1xf32>
    %14 = math.rsqrt %13 : vector<16x1xf32>
    %15 = vector.broadcast %14 : vector<16x1xf32> to vector<16x32xf32>
    %16 = arith.mulf %6, %15 : vector<16x32xf32>
    %c0_5 = arith.constant 0 : index
    %c0_6 = arith.constant 0 : index
    %17 = vector.load %arg2[%c0_5, %c0_6] : memref<1x32xf32, #tpu.memory_space<vmem>>, vector<1x32xf32>
    %18 = vector.broadcast %17 : vector<1x32xf32> to vector<16x32xf32>
    %19 = arith.mulf %16, %18 : vector<16x32xf32>
    %c0_7 = arith.constant 0 : index
    %c0_8 = arith.constant 0 : index
    %20 = vector.load %arg3[%c0_7, %c0_8] : memref<1x32xf32, #tpu.memory_space<vmem>>, vector<1x32xf32>
    %21 = vector.broadcast %20 : vector<1x32xf32> to vector<16x32xf32>
    %22 = arith.addf %19, %21 : vector<16x32xf32>
    %c0_9 = arith.constant 0 : index
    %c0_10 = arith.constant 0 : index
    %23 = vector.load %arg5[%c0_9, %c0_10] : memref<16x32xf32, #tpu.memory_space<vmem>>, vector<16x32xf32>
    tpu.vector_store %arg5[%c0_9, %c0_10], %22 {strides = array<i32>} : memref<16x32xf32, #tpu.memory_space<vmem>>, vector<16x32xf32>,
    %c0_11 = arith.constant 0 : index
    %c0_12 = arith.constant 0 : index
    %24 = vector.load %arg4[%c0_11, %c0_12] : memref<32x4xf32, #tpu.memory_space<vmem>>, vector<32x4xf32>
    %cst_13 = arith.constant dense<0.000000e+00> : vector<16x4xf32>
    %25 = tpu.matmul %22, %24, %cst_13 {dimension_numbers = #tpu.dot_dimension_numbers<[1], [0], [0], [1], [0, 0, 1, 1], [], []>} : vector<16x32xf32>, vector<32x4xf32>, vector<16x4xf32> -> vector<16x4xf32>
    %c0_14 = arith.constant 0 : index
    %c0_15 = arith.constant 0 : index
    %26 = vector.load %arg6[%c0_14, %c0_15] : memref<16x4xf32, #tpu.memory_space<vmem>>, vector<16x4xf32>
    tpu.vector_store %arg6[%c0_14, %c0_15], %25 {strides = array<i32>} : memref<16x4xf32, #tpu.memory_space<vmem>>, vector<16x4xf32>,
    return
  }
  func.func @transform_0(%arg0: i32) -> (i32, i32) {
    %c0_i32 = arith.constant 0 : i32
    %c0_i32_0 = arith.constant 0 : i32
    return %arg0, %c0_i32 : i32, i32
  }
  func.func @transform_1(%arg0: i32) -> (i32, i32) {
    %c0_i32 = arith.constant 0 : i32
    %c0_i32_0 = arith.constant 0 : i32
    %c0_i32_1 = arith.constant 0 : i32
    return %c0_i32, %c0_i32_0 : i32, i32
  }
  func.func @transform_2(%arg0: i32) -> (i32, i32) {
    %c0_i32 = arith.constant 0 : i32
    %c0_i32_0 = arith.constant 0 : i32
    %c0_i32_1 = arith.constant 0 : i32
    return %c0_i32, %c0_i32_0 : i32, i32
  }
  func.func @transform_3(%arg0: i32) -> (i32, i32) {
    %c0_i32 = arith.constant 0 : i32
    %c0_i32_0 = arith.constant 0 : i32
    %c0_i32_1 = arith.constant 0 : i32
    return %c0_i32, %c0_i32_0 : i32, i32
  }
  func.func @transform_4(%arg0: i32) -> (i32, i32) {
    %c0_i32 = arith.constant 0 : i32
    %c0_i32_0 = arith.constant 0 : i32
    return %arg0, %c0_i32 : i32, i32
  }
  func.func @transform_5(%arg0: i32) -> (i32, i32) {
    %c0_i32 = arith.constant 0 : i32
    %c0_i32_0 = arith.constant 0 : i32
    return %arg0, %c0_i32 : i32, i32
  }
}

module attributes {stable_mosaic.version = 11 : i64} {
  func.func @_moe_group_kernel(%arg0: i32, %arg1: i32, %arg2: memref<8xi32, #tpu.memory_space<smem>>, %arg3: memref<8x32xf32, #tpu.memory_space<vmem>>, %arg4: memref<1x32x64xf32, #tpu.memory_space<vmem>>, %arg5: memref<1x32x64xf32, #tpu.memory_space<vmem>>, %arg6: memref<1x64x32xf32, #tpu.memory_space<vmem>>, %arg7: memref<8x32xf32, #tpu.memory_space<vmem>>, %arg8: memref<8x32xf32, #tpu.memory_space<vmem>>) attributes {dimension_semantics = [#tpu.dimension_semantics<arbitrary>, #tpu.dimension_semantics<arbitrary>], iteration_bounds = array<i64: 8, 1>, scalar_prefetch = 1 : i64, scratch_operands = 1 : i64, tpu.core_type = #tpu.core_type<tc>, window_params = [{transform_indices = @transform_0, window_bounds = array<i64: 8, 32>}, {transform_indices = @transform_1, window_bounds = array<i64: 1, 32, 64>}, {transform_indices = @transform_2, window_bounds = array<i64: 1, 32, 64>}, {transform_indices = @transform_3, window_bounds = array<i64: 1, 64, 32>}, {transform_indices = @transform_4, window_bounds = array<i64: 8, 32>}]} {
    %c0_i32 = arith.constant 0 : i32
    %0 = arith.cmpi eq, %arg1, %c0_i32 : i32
    %1 = arith.extui %0 : i1 to i32
    %c0_i32_0 = arith.constant 0 : i32
    %2 = arith.cmpi ne, %1, %c0_i32_0 : i32
    scf.if %2 {
      %cst_20 = arith.constant 0.000000e+00 : f32
      %26 = vector.broadcast %cst_20 : f32 to vector<8x32xf32>
      %c0_21 = arith.constant 0 : index
      %c0_22 = arith.constant 0 : index
      %27 = vector.load %arg8[%c0_21, %c0_22] : memref<8x32xf32, #tpu.memory_space<vmem>>, vector<8x32xf32>
      tpu.vector_store %arg8[%c0_21, %c0_22], %26 {strides = array<i32>} : memref<8x32xf32, #tpu.memory_space<vmem>>, vector<8x32xf32>,
    } else {
    }
    %c0 = arith.constant 0 : index
    %c0_1 = arith.constant 0 : index
    %3 = vector.load %arg3[%c0, %c0_1] : memref<8x32xf32, #tpu.memory_space<vmem>>, vector<8x32xf32>
    %c0_2 = arith.constant 0 : index
    %c0_3 = arith.constant 0 : index
    %c0_4 = arith.constant 0 : index
    %4 = vector.load %arg4[%c0_2, %c0_3, %c0_4] : memref<1x32x64xf32, #tpu.memory_space<vmem>>, vector<1x32x64xf32>
    %5 = vector.shape_cast %4 : vector<1x32x64xf32> to vector<32x64xf32>
    %c0_5 = arith.constant 0 : index
    %c0_6 = arith.constant 0 : index
    %c0_7 = arith.constant 0 : index
    %6 = vector.load %arg5[%c0_5, %c0_6, %c0_7] : memref<1x32x64xf32, #tpu.memory_space<vmem>>, vector<1x32x64xf32>
    %7 = vector.shape_cast %6 : vector<1x32x64xf32> to vector<32x64xf32>
    %c0_8 = arith.constant 0 : index
    %c0_9 = arith.constant 0 : index
    %c0_10 = arith.constant 0 : index
    %8 = vector.load %arg6[%c0_8, %c0_9, %c0_10] : memref<1x64x32xf32, #tpu.memory_space<vmem>>, vector<1x64x32xf32>
    %9 = vector.shape_cast %8 : vector<1x64x32xf32> to vector<64x32xf32>
    %cst = arith.constant dense<0.000000e+00> : vector<8x64xf32>
    %10 = tpu.matmul %3, %5, %cst {dimension_numbers = #tpu.dot_dimension_numbers<[1], [0], [0], [1], [0, 0, 1, 1], [], []>} : vector<8x32xf32>, vector<32x64xf32>, vector<8x64xf32> -> vector<8x64xf32>
    %11 = arith.negf %10 : vector<8x64xf32>
    %12 = math.exp %11 : vector<8x64xf32>
    %cst_11 = arith.constant 1.000000e+00 : f32
    %13 = vector.broadcast %cst_11 : f32 to vector<8x64xf32>
    %14 = arith.addf %13, %12 : vector<8x64xf32>
    %15 = arith.divf %13, %14 : vector<8x64xf32>
    %16 = arith.mulf %10, %15 : vector<8x64xf32>
    %cst_12 = arith.constant dense<0.000000e+00> : vector<8x64xf32>
    %17 = tpu.matmul %3, %7, %cst_12 {dimension_numbers = #tpu.dot_dimension_numbers<[1], [0], [0], [1], [0, 0, 1, 1], [], []>} : vector<8x32xf32>, vector<32x64xf32>, vector<8x64xf32> -> vector<8x64xf32>
    %c0_13 = arith.constant 0 : index
    %c0_14 = arith.constant 0 : index
    %18 = vector.load %arg8[%c0_13, %c0_14] : memref<8x32xf32, #tpu.memory_space<vmem>>, vector<8x32xf32>
    %19 = arith.mulf %16, %17 : vector<8x64xf32>
    %cst_15 = arith.constant dense<0.000000e+00> : vector<8x32xf32>
    %20 = tpu.matmul %19, %9, %cst_15 {dimension_numbers = #tpu.dot_dimension_numbers<[1], [0], [0], [1], [0, 0, 1, 1], [], []>} : vector<8x64xf32>, vector<64x32xf32>, vector<8x32xf32> -> vector<8x32xf32>
    %21 = arith.addf %18, %20 : vector<8x32xf32>
    %c0_16 = arith.constant 0 : index
    %c0_17 = arith.constant 0 : index
    %22 = vector.load %arg8[%c0_16, %c0_17] : memref<8x32xf32, #tpu.memory_space<vmem>>, vector<8x32xf32>
    tpu.vector_store %arg8[%c0_16, %c0_17], %21 {strides = array<i32>} : memref<8x32xf32, #tpu.memory_space<vmem>>, vector<8x32xf32>,
    %c0_i32_18 = arith.constant 0 : i32
    %23 = arith.cmpi eq, %arg1, %c0_i32_18 : i32
    %24 = arith.extui %23 : i1 to i32
    %c0_i32_19 = arith.constant 0 : i32
    %25 = arith.cmpi ne, %24, %c0_i32_19 : i32
    scf.if %25 {
      %c0_20 = arith.constant 0 : index
      %c0_21 = arith.constant 0 : index
      %26 = vector.load %arg8[%c0_20, %c0_21] : memref<8x32xf32, #tpu.memory_space<vmem>>, vector<8x32xf32>
      %c0_22 = arith.constant 0 : index
      %c0_23 = arith.constant 0 : index
      %27 = vector.load %arg7[%c0_22, %c0_23] : memref<8x32xf32, #tpu.memory_space<vmem>>, vector<8x32xf32>
      tpu.vector_store %arg7[%c0_22, %c0_23], %26 {strides = array<i32>} : memref<8x32xf32, #tpu.memory_space<vmem>>, vector<8x32xf32>,
    } else {
    }
    return
  }
  func.func @transform_0(%arg0: i32, %arg1: i32, %arg2: memref<8xi32, #tpu.memory_space<smem>>) -> (i32, i32) {
    %c0_i32 = arith.constant 0 : i32
    %c0_i32_0 = arith.constant 0 : i32
    return %arg0, %c0_i32 : i32, i32
  }
  func.func @transform_1(%arg0: i32, %arg1: i32, %arg2: memref<8xi32, #tpu.memory_space<smem>>) -> (i32, i32, i32) {
    %0 = arith.index_cast %arg0 : i32 to index
    %1 = memref.load %arg2[%0] : memref<8xi32, #tpu.memory_space<smem>>
    %c0_i32 = arith.constant 0 : i32
    %c0_i32_0 = arith.constant 0 : i32
    return %1, %c0_i32, %arg1 : i32, i32, i32
  }
  func.func @transform_2(%arg0: i32, %arg1: i32, %arg2: memref<8xi32, #tpu.memory_space<smem>>) -> (i32, i32, i32) {
    %0 = arith.index_cast %arg0 : i32 to index
    %1 = memref.load %arg2[%0] : memref<8xi32, #tpu.memory_space<smem>>
    %c0_i32 = arith.constant 0 : i32
    %c0_i32_0 = arith.constant 0 : i32
    return %1, %c0_i32, %arg1 : i32, i32, i32
  }
  func.func @transform_3(%arg0: i32, %arg1: i32, %arg2: memref<8xi32, #tpu.memory_space<smem>>) -> (i32, i32, i32) {
    %0 = arith.index_cast %arg0 : i32 to index
    %1 = memref.load %arg2[%0] : memref<8xi32, #tpu.memory_space<smem>>
    %c0_i32 = arith.constant 0 : i32
    %c0_i32_0 = arith.constant 0 : i32
    return %1, %arg1, %c0_i32 : i32, i32, i32
  }
  func.func @transform_4(%arg0: i32, %arg1: i32, %arg2: memref<8xi32, #tpu.memory_space<smem>>) -> (i32, i32) {
    %c0_i32 = arith.constant 0 : i32
    %c0_i32_0 = arith.constant 0 : i32
    return %arg0, %c0_i32 : i32, i32
  }
}

</mosaic_0001>

<bundles_post_ra>
// kernel: wm2_transformer_block.5
= control target key start
LH: loop header
LB: loop body
LE: loop exit
PB: predicated region body
PF: predicated region fallthrough
CT: control target
= control target key end

     0   :  { %9 = vsyncpa [#allocation3], 0  ;;  %s222_s15 = smov [#allocation2]   ;;  %s277_s0 = inlined_call_operand.vmem [shape: f32[16,32], index: 0, kind: input, shape index: {}]   ;;  %s278_s1 = inlined_call_operand.vmem [shape: f32[1,32], index: 1, kind: input, shape index: {}]   ;;  %s279_s2 = inlined_call_operand.vmem [shape: f32[1,32], index: 2, kind: input, shape index: {}]   ;;  %s280_s3 = inlined_call_operand.hbm [shape: f32[32,96], index: 3, kind: input, shape index: {}]   ;;  %s281_s4 = inlined_call_operand.vmem [shape: f32[16,96], index: 4, kind: output, shape index: {}]  }
   0x1   :  { %s21_s16 = sshll.u32 %s222_s15, 4  ;;  %s22_s16 = int_to_ptr.vmem [resolvable:$true] %s21_s16 }
   0x2   :  { %s208_s17 = scalar_lea.vmem %s22_s16, 512  ;;  %p213_p1 = scmp.lt.s32.totalorder %s22_s16, %s22_s16 }
   0x3   :  { %p209_p0 = scmp.ne.s32.totalorder %s22_s16, %s208_s17  ;;  %p214_p2 = scmp.lt.s32.totalorder %s208_s17, %s208_s17 }
   0x5   :  { %p215_p3 = por %p214_p2, %p213_p1 }
   0x7   :  { %p216_p4 = pnand %p215_p3, %p209_p0 }
   0x9   :  { %219 = shalt.err (!%p216_p4)
}
   0xa   :  { %s223_s18 = smov 128   ;;  %s224_s19 = smov 8  }
   0xb   :  { %27 = dma.hbm_to_vmem [thread:$0]  %s280_s3, 512, %s22_s16, [#allocation3], %s223_s18, %s223_s18, %s224_s19  }
   0xc   :  { %220 = dma.done.wait [#allocation3], 512  }
   0xd   :  { %221 = vsyncadd [#allocation3], 4294966784  ;;  %vm33_vm0 = vcmask 261120   ;;  %v31_v0 = vld [vmem:[%s277_s0] sm:$0xff]  ;;  %v32_v1 = vld [vmem:[%s277_s0 + $0x8] sm:$0xff]  ;;  %vm164_vm1 = vcmask 785408  }
   0xe   :  { %v34_v2 = vsel %vm33_vm0, %v31_v0, 0.0  ;;  %v37_v3 = vsel %vm33_vm0, %v32_v1, 0.0  ;;  %v82_v14 = vld [vmem:[#allocation2 + $0x18] sm:$0xff]  ;;  %v81_v15 = vld [vmem:[#allocation2 + $0x10] sm:$0xff]  ;;  %v80_v16 = vld [vmem:[#allocation2 + $0x8] sm:$0xff] }
   0xf   :  { %35 = vadd.xlane.f32.xlu0 %v34_v2  ;;  %182 = vmatprep.subr.mxu0 %v82_v14  ;;  %v79_v17 = vld [vmem:[#allocation2] sm:$0xff] }
  0x10   :  { %183 = vmatpush3.msra.mxu0 %v82_v14  ;;  %v172_v25 = vld [vmem:[%s278_s1] ss:$0 sm:$0xff] }
  0x11   :  { %184 = vmatprep.subr.mxu0 %v81_v15  ;;  %v173_v27 = vld [vmem:[%s279_s2] ss:$0 sm:$0xff] }
  0x12   :  { %185 = vmatpush3.msra.mxu0 %v81_v15 }
  0x13   :  { %38 = vadd.xlane.f32.xlu0 %v37_v3  ;;  %186 = vmatprep.subr.mxu0 %v80_v16 }
  0x14   :  { %187 = vmatpush3.msra.mxu0 %v80_v16 }
  0x15   :  { %188 = vmatprep.subr.mxu0 %v79_v17 }
  0x16   :  { %189 = vmatpush3.msra.mxu0 %v79_v17 }
  0x98   :  { %v36_v4 = vpop.xlane.xlu0 %35 }
  0x99   :  { %v41_v5 = vmul.f32 0.03125, %v36_v4 }
  0x9b   :  { %v43_v6 = vsub.f32 %v31_v0, %v41_v5 }
  0x9c   :  { %v39_v7 = vpop.xlane.xlu0 %38 }
  0x9d   :  { %v42_v8 = vmul.f32 0.03125, %v39_v7  ;;  %v45_v9 = vmul.f32 %v43_v6, %v43_v6 }
  0x9f   :  { %v44_v10 = vsub.f32 %v32_v1, %v42_v8  ;;  %v47_v11 = vsel %vm33_vm0, %v45_v9, 0.0 }
  0xa0   :  { %48 = vadd.xlane.f32.xlu1 %v47_v11 }
  0xa1   :  { %v46_v12 = vmul.f32 %v44_v10, %v44_v10 }
  0xa3   :  { %v50_v13 = vsel %vm33_vm0, %v46_v12, 0.0 }
  0xa4   :  { %51 = vadd.xlane.f32.xlu1 %v50_v13 }
 0x129   :  { %v49_v18 = vpop.xlane.xlu1 %48 }
 0x12a   :  { %v53_v19 = vmul.f32 0.03125, %v49_v18 }
 0x12c   :  { %v55_v20 = vadd.f32 1e-05, %v53_v19 }
 0x12d   :  { %v52_v21 = vpop.xlane.xlu1 %51 }
 0x12e   :  { %196 = vrsqrt.f32 %v55_v20  ;;  %v54_v22 = vmul.f32 0.03125, %v52_v21 }
 0x130   :  { %v56_v23 = vadd.f32 1e-05, %v54_v22 }
 0x132   :  { %198 = vrsqrt.f32 %v56_v23 }
 0x13b   :  { %v197_v24 = vpop.eup %196 }
 0x13c   :  { %v59_v26 = vmul.f32 %v197_v24, %v43_v6 }
 0x13e   :  { %v68_v28 = vmul.f32 %v172_v25, %v59_v26 }
 0x13f   :  { %v199_v29 = vpop.eup %198 }
 0x140   :  { %v60_v30 = vmul.f32 %v199_v29, %v44_v10  ;;  %v77_v31 = vadd.f32 %v173_v27, %v68_v28 }
 0x142   :  { %v69_v32 = vmul.f32 %v172_v25, %v60_v30  ;;  %190 = vmatprep.mubr.msk.f32.mxu0 %vm33_vm0, %v77_v31 }
 0x144   :  { %v78_v33 = vadd.f32 %v173_v27, %v69_v32 }
 0x146   :  { %191 = vmatmul.mubr.msk.f32.vlgmr.msra.gmra.mxu0 %vm33_vm0, %v78_v33 }
 0x206   :  { %v192_v34 = vpop.f32.mrf.mxu0 }
 0x207   :  { %166 = vst.msk [vmem:[%s281_s4 + $0x8] sm:$0xff] %vm164_vm1, %v192_v34 }
 0x208   :  { %v155_v35 = vpop.f32.mrf.mxu0 }
 0x209   :  { %165 = vst.msk [vmem:[%s281_s4] sm:$0xff] %vm164_vm1, %v155_v35 }
 0x20a   :  { %171 = vsyncpa [#allocation3], 1 }

// kernel: wm2_transformer_block.6
= control target key start
LH: loop header
LB: loop body
LE: loop exit
PB: predicated region body
PF: predicated region fallthrough
CT: control target
= control target key end

     0   :  { %s515_s12 = smov 0   ;;  %s550_s0 = inlined_call_operand.vmem [shape: f32[8,8,8], index: 0, kind: input, shape index: {}]   ;;  %s551_s1 = inlined_call_operand.vmem [shape: f32[8,8,8], index: 1, kind: input, shape index: {}]   ;;  %s552_s2 = inlined_call_operand.vmem [shape: f32[8,8,8], index: 2, kind: input, shape index: {}]   ;;  %s553_s3 = inlined_call_operand.vmem [shape: f32[8,8,8], index: 3, kind: output, shape index: {}]  }
   0x1 LB: > { %s443_s13 = sadd.s32 4294967295, %s491_s12   ;;  %p447_p0 = scmp.ge.s32.totalorder %s491_s12, 1  ;;  %s491_s12 = sphi %s515_s12, %s13_s12  }
   0x2   : > { %p154_p1 = scmp.lt.s32.totalorder %s491_s12, 9 }
   0x4   : > { %p155_p2 = pnand %p447_p0, %p154_p1 }
   0x5   : > { %p184_p3 = scmp.lt.s32.totalorder (!%p155_p2), %s443_s13, 7 }
   0x6   : > { %158 = sbr.rel (%p155_p2) target bundleno = 566 (0x236), region = 32 }
   0xb   : > { %v493_v0 = vmov 0.0   ;;  %vm494_vm0 = vmmov 0   ;;  %s555_s13 = smov (!%p184_p3, %s443_s13), 7  ;;  %vm203_vm1 = vcmask 64512  }
   0xc   : > { %461 = vmatprep.subr.mxu0 %v493_v0  ;;  %463 = vmatprep.mubr.msk.f32.mxu0 %vm494_vm0, %v493_v0  ;;  %s523_s14 = sshll.u32 %s555_s13, 3 }
   0xd   : > { %466 = vmatprep.subr.mxu1 %v493_v0  ;;  %468 = vmatprep.mubr.msk.f32.mxu1 %vm494_vm0, %v493_v0  ;;  %s191_s17 = scalar_lea.vmem %s551_s1, %s523_s14  ;;  %s187_s20 = scalar_lea.vmem %s550_s0, %s523_s14 }
   0xe   : > { %v201_v1 = vld [vmem:[%s191_s17] sm:$0xff]  ;;  %s195_s23 = scalar_lea.vmem %s552_s2, %s523_s14  ;;  %s199_s26 = scalar_lea.vmem %s553_s3, %s523_s14 }
   0xf   : > { %462 = vmatpush3.xpose.msk.msra.mxu0 %vm203_vm1, %v201_v1  ;;  %v200_v2 = vld [vmem:[%s187_s20] sm:$0xff] }
  0x10   : > { %v202_v7 = vld [vmem:[%s195_s23] sm:$0xff] }
  0x11   : > { %467 = vmatpush3.msra.mxu1 %v202_v7 }
  0x12   : > { %464 = vmatmul.mubr.msk.f32.vlgmr.msra.gmra.mxu0 %vm203_vm1, %v200_v2 }
  0xd2   : > { %v276_v3 = vpop.f32.mrf.mxu0 }
  0xd3   : > { %v280_v4 = vmul.f32 0.35355338, %v276_v3 }
  0xd4   : > { %v465_v5 = vpop.f32.mrf.mxu0 }
  0xd5   : > { %v281_v6 = vsel %vm203_vm1, %v280_v4, -inf }
  0xd6   : > { %282 = vmax.xlane.f32.xlu0 %v281_v6 }
 0x15f   : > { %v283_v8 = vpop.xlane.xlu0 %282 }
 0x160   : > { %v284_v9 = vsub.f32 %v280_v4, %v283_v8 }
 0x162   : > { %v285_v10 = vmul.f32 1.442695, %v284_v9 }
 0x164   : > { %481 = vpow2.f32 %v285_v10 }
 0x171   : > { %v482_v11 = vpop.eup %481 }
 0x172   : > { %469 = vmatmul.mubr.msk.f32.vlgmr.msra.gmra.mxu1 %vm203_vm1, %v482_v11  ;;  %v287_v12 = vsel %vm203_vm1, %v482_v11, 0.0 }
 0x173   : > { %288 = vadd.xlane.f32.xlu0 %v287_v12 }
 0x1fc   : > { %v289_v13 = vpop.xlane.xlu0 %288 }
 0x1fd   : > { %483 = vrcp.f32 %v289_v13 }
 0x20a   : > { %v484_v14 = vpop.eup %483 }
 0x232   : > { %v359_v15 = vpop.f32.mrf.mxu1 }
 0x233   : > { %v364_v16 = vmul.f32 %v484_v14, %v359_v15 }
 0x234   : > { %v470_v17 = vpop.f32.mrf.mxu1 }
 0x235   : > { %365 = vst.msk [vmem:[%s199_s26] sm:$0xff] %vm203_vm1, %v364_v16 }
 0x236 PF: > { %s13_s12 = sadd.s32 1, %s491_s12  }
 0x237   : > { %p10_p4 = scmp.ge.s32.totalorder %s13_s12, 10  }
 0x239   :  { %12 = sbr.rel (!%p10_p4) target bundleno = 1 (0x1), region = 68 }

// kernel: wm2_transformer_block.7
= control target key start
LH: loop header
LB: loop body
LE: loop exit
PB: predicated region body
PF: predicated region fallthrough
CT: control target
= control target key end

     0   :  { %vm22_vm0 = vcmask 261120   ;;  %s185_s1 = inlined_call_operand.vmem [shape: f32[32,32], index: 1, kind: input, shape index: {}]   ;;  %s186_s0 = inlined_call_operand.vmem [shape: f32[16,32], index: 0, kind: input, shape index: {}]   ;;  %s187_s2 = inlined_call_operand.vmem [shape: f32[16,32], index: 2, kind: input, shape index: {}]   ;;  %s188_s3 = inlined_call_operand.vmem [shape: f32[16,32], index: 3, kind: output, shape index: {}]  }
   0x1   :  { %v21_v0 = vld [vmem:[%s185_s1 + $0x18] sm:$0xff]  ;;  %v20_v1 = vld [vmem:[%s185_s1 + $0x10] sm:$0xff]  ;;  %v16_v2 = vld [vmem:[%s186_s0] sm:$0xff] }
   0x2   :  { %120 = vmatprep.subr.mxu0 %v21_v0  ;;  %v19_v3 = vld [vmem:[%s185_s1 + $0x8] sm:$0xff]  ;;  %128 = vmatprep.mubr.msk.f32.mxu0 %vm22_vm0, %v16_v2  ;;  %v18_v4 = vld [vmem:[%s185_s1] sm:$0xff] }
   0x3   :  { %121 = vmatpush3.msra.mxu0 %v21_v0  ;;  %v17_v5 = vld [vmem:[%s186_s0 + $0x8] sm:$0xff]  ;;  %v14_v8 = vld [vmem:[%s187_s2] sm:$0xff] }
   0x4   :  { %122 = vmatprep.subr.mxu0 %v20_v1  ;;  %v15_v6 = vld [vmem:[%s187_s2 + $0x8] sm:$0xff] }
   0x5   :  { %123 = vmatpush3.msra.mxu0 %v20_v1 }
   0x6   :  { %124 = vmatprep.subr.mxu0 %v19_v3 }
   0x7   :  { %125 = vmatpush3.msra.mxu0 %v19_v3 }
   0x8   :  { %126 = vmatprep.subr.mxu0 %v18_v4 }
   0x9   :  { %127 = vmatpush3.msra.mxu0 %v18_v4 }
   0xa   :  { %129 = vmatmul.mubr.msk.f32.vlgmr.msra.gmra.mxu0 %vm22_vm0, %v17_v5 }
  0xca   :  { %v130_v7 = vpop.f32.mrf.mxu0 }
  0xcb   :  { %v105_v9 = vadd.f32 %v130_v7, %v15_v6 }
  0xcc   :  { %v95_v10 = vpop.f32.mrf.mxu0 }
  0xcd   :  { %107 = vst.msk [vmem:[%s188_s3 + $0x8] sm:$0xff] %vm22_vm0, %v105_v9  ;;  %v104_v11 = vadd.f32 %v95_v10, %v14_v8 }
  0xcf   :  { %106 = vst.msk [vmem:[%s188_s3] sm:$0xff] %vm22_vm0, %v104_v11 }

// kernel: wm2_transformer_block.8
= control target key start
LH: loop header
LB: loop body
LE: loop exit
PB: predicated region body
PF: predicated region fallthrough
CT: control target
= control target key end

     0   :  { %vm21_vm0 = vcmask 261120   ;;  %vm154_vm1 = vcmask 31744   ;;  %s264_s0 = inlined_call_operand.vmem [shape: f32[16,32], index: 0, kind: input, shape index: {}]   ;;  %s265_s3 = inlined_call_operand.vmem [shape: f32[32,4], index: 3, kind: input, shape index: {}]   ;;  %s266_s1 = inlined_call_operand.vmem [shape: f32[1,32], index: 1, kind: input, shape index: {}]   ;;  %s267_s2 = inlined_call_operand.vmem [shape: f32[1,32], index: 2, kind: input, shape index: {}]   ;;  %s268_s4 = inlined_call_operand.vmem [shape: f32[16,32], index: 4, kind: output, shape index: {0}]   ;;  %s269_s5 = inlined_call_operand.vmem [shape: f32[16,4], index: 5, kind: output, shape index: {1}]  }
   0x1   :  { %v19_v0 = vld [vmem:[%s264_s0] sm:$0xff]  ;;  %v20_v1 = vld [vmem:[%s264_s0 + $0x8] sm:$0xff]  ;;  %v72_v14 = vld [vmem:[%s265_s3 + $0x18] sm:$0xff] }
   0x2   :  { %v22_v2 = vsel %vm21_vm0, %v19_v0, 0.0  ;;  %v25_v3 = vsel %vm21_vm0, %v20_v1, 0.0  ;;  %v71_v15 = vld [vmem:[%s265_s3 + $0x10] sm:$0xff]  ;;  %175 = vmatprep.subr.mxu0 %v72_v14  ;;  %v70_v16 = vld [vmem:[%s265_s3 + $0x8] sm:$0xff]  ;;  %v69_v17 = vld [vmem:[%s265_s3] sm:$0xff] }
   0x3   :  { %23 = vadd.xlane.f32.xlu0 %v22_v2  ;;  %176 = vmatpush3.msra.mxu0 %v72_v14  ;;  %v165_v25 = vld [vmem:[%s266_s1] ss:$0 sm:$0xff] }
   0x4   :  { %177 = vmatprep.subr.mxu0 %v71_v15  ;;  %v166_v27 = vld [vmem:[%s267_s2] ss:$0 sm:$0xff] }
   0x5   :  { %178 = vmatpush3.msra.mxu0 %v71_v15 }
   0x6   :  { %179 = vmatprep.subr.mxu0 %v70_v16 }
   0x7   :  { %26 = vadd.xlane.f32.xlu0 %v25_v3  ;;  %180 = vmatpush3.msra.mxu0 %v70_v16 }
   0x8   :  { %181 = vmatprep.subr.mxu0 %v69_v17 }
   0x9   :  { %182 = vmatpush3.msra.mxu0 %v69_v17 }
  0x8c   :  { %v24_v4 = vpop.xlane.xlu0 %23 }
  0x8d   :  { %v29_v5 = vmul.f32 0.03125, %v24_v4 }
  0x8f   :  { %v31_v6 = vsub.f32 %v19_v0, %v29_v5 }
  0x90   :  { %v27_v7 = vpop.xlane.xlu0 %26 }
  0x91   :  { %v30_v8 = vmul.f32 0.03125, %v27_v7  ;;  %v33_v9 = vmul.f32 %v31_v6, %v31_v6 }
  0x93   :  { %v32_v10 = vsub.f32 %v20_v1, %v30_v8  ;;  %v35_v11 = vsel %vm21_vm0, %v33_v9, 0.0 }
  0x94   :  { %36 = vadd.xlane.f32.xlu1 %v35_v11 }
  0x95   :  { %v34_v12 = vmul.f32 %v32_v10, %v32_v10 }
  0x97   :  { %v38_v13 = vsel %vm21_vm0, %v34_v12, 0.0 }
  0x98   :  { %39 = vadd.xlane.f32.xlu1 %v38_v13 }
 0x11d   :  { %v37_v18 = vpop.xlane.xlu1 %36 }
 0x11e   :  { %v41_v19 = vmul.f32 0.03125, %v37_v18 }
 0x120   :  { %v43_v20 = vadd.f32 1e-05, %v41_v19 }
 0x121   :  { %v40_v21 = vpop.xlane.xlu1 %39 }
 0x122   :  { %186 = vrsqrt.f32 %v43_v20  ;;  %v42_v22 = vmul.f32 0.03125, %v40_v21 }
 0x124   :  { %v44_v23 = vadd.f32 1e-05, %v42_v22 }
 0x126   :  { %188 = vrsqrt.f32 %v44_v23 }
 0x12f   :  { %v187_v24 = vpop.eup %186 }
 0x130   :  { %v47_v26 = vmul.f32 %v187_v24, %v31_v6 }
 0x132   :  { %v56_v28 = vmul.f32 %v165_v25, %v47_v26 }
 0x133   :  { %v189_v29 = vpop.eup %188 }
 0x134   :  { %v48_v30 = vmul.f32 %v189_v29, %v32_v10  ;;  %v65_v31 = vadd.f32 %v166_v27, %v56_v28 }
 0x136   :  { %v57_v32 = vmul.f32 %v165_v25, %v48_v30  ;;  %67 = vst.msk [vmem:[%s268_s4] sm:$0xff] %vm21_vm0, %v65_v31  ;;  %183 = vmatprep.mubr.msk.f32.mxu0 %vm21_vm0, %v65_v31 }
 0x138   :  { %v66_v33 = vadd.f32 %v166_v27, %v57_v32 }
 0x13a   :  { %68 = vst.msk [vmem:[%s268_s4 + $0x8] sm:$0xff] %vm21_vm0, %v66_v33  ;;  %184 = vmatmul.mubr.msk.f32.vlgmr.msra.gmra.mxu0 %vm21_vm0, %v66_v33 }
 0x1fa   :  { %v185_v34 = vpop.f32.mrf.mxu0 }
 0x1fb   :  { %156 = vst.msk [vmem:[%s269_s5 + $0x8] sm:$0xff] %vm154_vm1, %v185_v34 }
 0x1fc   :  { %v145_v35 = vpop.f32.mrf.mxu0 }
 0x1fd   :  { %155 = vst.msk [vmem:[%s269_s5] sm:$0xff] %vm154_vm1, %v145_v35 }

// kernel: eq.1
= control target key start
LH: loop header
LB: loop body
LE: loop exit
PB: predicated region body
PF: predicated region fallthrough
CT: control target
= control target key end

     0   :  { %s133_s10 = smov 30   ;;  %s134_s11 = smov 26   ;;  %vm3_vm0 = vcmask 15360   ;;  %vm9_vm1 = vcmask 261360   ;;  %vm15_vm2 = vcmask 244960   ;;  %vm21_vm3 = vcmask 228560   ;;  %s209_s0 = inlined_call_operand.vmem [shape: s32[16,2], index: 0, kind: input, shape index: {}]   ;;  %s210_s1 = inlined_call_operand.vmem [shape: s32[32], index: 1, kind: output, shape index: {}]  }
   0x1   :  { %v103_v0 = vld [vmem:[%s209_s0 + $0xf] sm:$0x1]   ;;  %v105_v1 = vld [vmem:[%s209_s0 + $0xd] sm:$0x1]   ;;  %v104_v2 = vld [vmem:[%s209_s0 + $0xe] sm:$0x1]  }
   0x2   :  { %7 = vrot.lane.b32.xlu0 %v103_v0, %s133_s10  ;;  %19 = vrot.lane.b32.xlu1 %v105_v1, %s134_s11  ;;  %v106_v3 = vld [vmem:[%s209_s0 + $0xc] sm:$0x1]   ;;  %s135_s16 = smov 28   ;;  %s136_s17 = smov 24   ;;  %v107_v4 = vld [vmem:[%s209_s0 + $0xb] sm:$0x1]  }
   0x3   :  { %v108_v5 = vld [vmem:[%s209_s0 + $0xa] sm:$0x1]   ;;  %v2_v6 = vld [vmem:[%s209_s0] sm:$0x1]   ;;  %s137_s24 = smov 22   ;;  %s138_s25 = smov 20  }
   0x4   :  { %4 = vst.msk [vmem:[#allocation0] sm:$0x1] %vm3_vm0, %v2_v6   ;;  %v109_v7 = vld [vmem:[%s209_s0 + $0x9] sm:$0x1]   ;;  %v110_v8 = vld [vmem:[%s209_s0 + $0x8] sm:$0x1]  }
   0x5   :  { %s139_s30 = smov 18   ;;  %s140_s2 = smov 16   ;;  %v111_v9 = vld [vmem:[%s209_s0 + $0x7] sm:$0x1]   ;;  %v112_v10 = vld [vmem:[%s209_s0 + $0x6] sm:$0x1]  }
   0x6   :  { %13 = vrot.lane.b32.xlu0 %v104_v2, %s135_s16  ;;  %25 = vrot.lane.b32.xlu1 %v106_v3, %s136_s17  ;;  %s141_s7 = smov 14   ;;  %s142_s8 = smov 12   ;;  %v113_v11 = vld [vmem:[%s209_s0 + $0x5] sm:$0x1]   ;;  %v114_v12 = vld [vmem:[%s209_s0 + $0x4] sm:$0x1]  }
   0x7   :  { %s143_s13 = smov 10   ;;  %s144_s14 = smov 8   ;;  %v115_v13 = vld [vmem:[%s209_s0 + $0x3] sm:$0x1]   ;;  %v116_v14 = vld [vmem:[%s209_s0 + $0x2] sm:$0x1]  }
   0x8   :  { %s145_s19 = smov 6   ;;  %s146_s20 = smov 4   ;;  %v117_v15 = vld [vmem:[%s209_s0 + $0x1] sm:$0x1]   ;;  %vm27_vm4 = vcmask 212160   ;;  %vm33_vm5 = vcmask 195760  }
   0x9   :  { %s147_s0 = smov 2   ;;  %vm39_vm6 = vcmask 179360   ;;  %vm45_vm7 = vcmask 162960   ;;  %vm51_vm8 = vcmask 146560   ;;  %vm57_vm9 = vcmask 130160  }
   0xa   :  { %31 = vrot.lane.b32.xlu0 %v107_v4, %s137_s24  ;;  %37 = vrot.lane.b32.xlu1 %v108_v5, %s138_s25  ;;  %vm63_vm10 = vcmask 113760   ;;  %vm69_vm11 = vcmask 97360   ;;  %vm75_vm12 = vcmask 80960   ;;  %vm81_vm13 = vcmask 64560  }
   0xb   :  { %vm87_vm14 = vcmask 48160   ;;  %vm93_vm15 = vcmask 31760  }
   0xe   :  { %43 = vrot.lane.b32.xlu0 %v109_v7, %s139_s30  ;;  %49 = vrot.lane.b32.xlu1 %v110_v8, %s140_s2 }
  0x12   :  { %55 = vrot.lane.b32.xlu0 %v111_v9, %s141_s7  ;;  %61 = vrot.lane.b32.xlu1 %v112_v10, %s142_s8 }
  0x16   :  { %67 = vrot.lane.b32.xlu0 %v113_v11, %s143_s13  ;;  %73 = vrot.lane.b32.xlu1 %v114_v12, %s144_s14 }
  0x1a   :  { %79 = vrot.lane.b32.xlu0 %v115_v13, %s145_s19  ;;  %85 = vrot.lane.b32.xlu1 %v116_v14, %s146_s20 }
  0x1e   :  { %91 = vrot.lane.b32.xlu0 %v117_v15, %s147_s0 }
  0x74   :  { %v8_v16 = vpop.permute.xlu0 %7   ;;  %v20_v17 = vpop.permute.xlu1 %19  }
  0x75   :  { %10 = vst.msk [vmem:[#allocation0] sm:$0x1] %vm9_vm1, %v8_v16  }
  0x78   :  { %v14_v18 = vpop.permute.xlu0 %13   ;;  %v26_v19 = vpop.permute.xlu1 %25  }
  0x79   :  { %16 = vst.msk [vmem:[#allocation0] sm:$0x1] %vm15_vm2, %v14_v18  }
  0x7a   :  { %22 = vst.msk [vmem:[#allocation0] sm:$0x1] %vm21_vm3, %v20_v17  }
  0x7b   :  { %28 = vst.msk [vmem:[#allocation0] sm:$0x1] %vm27_vm4, %v26_v19  }
  0x7c   :  { %v32_v20 = vpop.permute.xlu0 %31   ;;  %v38_v21 = vpop.permute.xlu1 %37  }
  0x7d   :  { %34 = vst.msk [vmem:[#allocation0] sm:$0x1] %vm33_vm5, %v32_v20  }
  0x7e   :  { %40 = vst.msk [vmem:[#allocation0] sm:$0x1] %vm39_vm6, %v38_v21  }
  0x80   :  { %v44_v22 = vpop.permute.xlu0 %43   ;;  %v50_v23 = vpop.permute.xlu1 %49  }
  0x81   :  { %46 = vst.msk [vmem:[#allocation0] sm:$0x1] %vm45_vm7, %v44_v22  }
  0x82   :  { %52 = vst.msk [vmem:[#allocation0] sm:$0x1] %vm51_vm8, %v50_v23  }
  0x84   :  { %v56_v24 = vpop.permute.xlu0 %55   ;;  %v62_v25 = vpop.permute.xlu1 %61  }
  0x85   :  { %58 = vst.msk [vmem:[#allocation0] sm:$0x1] %vm57_vm9, %v56_v24  }
  0x86   :  { %64 = vst.msk [vmem:[#allocation0] sm:$0x1] %vm63_vm10, %v62_v25  }
  0x88   :  { %v68_v26 = vpop.permute.xlu0 %67   ;;  %v74_v27 = vpop.permute.xlu1 %73  }
  0x89   :  { %70 = vst.msk [vmem:[#allocation0] sm:$0x1] %vm69_vm11, %v68_v26  }
  0x8a   :  { %76 = vst.msk [vmem:[#allocation0] sm:$0x1] %vm75_vm12, %v74_v27  }
  0x8c   :  { %v80_v28 = vpop.permute.xlu0 %79   ;;  %v86_v29 = vpop.permute.xlu1 %85  }
  0x8d   :  { %82 = vst.msk [vmem:[#allocation0] sm:$0x1] %vm81_vm13, %v80_v28  }
  0x8e   :  { %88 = vst.msk [vmem:[#allocation0] sm:$0x1] %vm87_vm14, %v86_v29  }
  0x90   :  { %v92_v30 = vpop.permute.xlu0 %91  }
  0x91   :  { %94 = vst.msk [vmem:[#allocation0] sm:$0x1] %vm93_vm15, %v92_v30  }
  0x98   :  { %v99_v31 = vld [vmem:[#allocation0] sm:$0x1] }
  0x99   :  { %102 = vst [vmem:[%s210_s1] sm:$0x1] %v99_v31 }

// kernel: custom-call
= control target key start
LH: loop header
LB: loop body
LE: loop exit
PB: predicated region body
PF: predicated region fallthrough
CT: control target
= control target key end

     0   :  { %s6_s0 = inlined_call_operand.vmem [shape: u32[8], index: 0, kind: output, shape index: {}]  }

// kernel: wm2_transformer_block.9
= control target key start
LH: loop header
LB: loop body
LE: loop exit
PB: predicated region body
PF: predicated region fallthrough
CT: control target
= control target key end

     0   :  { %s974_s0 = inlined_call_operand.vmem [shape: s32[8], index: 0, kind: input, shape index: {}]   ;;  %s975_s1 = inlined_call_operand.vmem [shape: f32[64,32], index: 1, kind: input, shape index: {}]   ;;  %s976_s2 = inlined_call_operand.vmem [shape: f32[4,32,64], index: 2, kind: input, shape index: {}]   ;;  %s977_s3 = inlined_call_operand.vmem [shape: f32[4,32,64], index: 3, kind: input, shape index: {}]   ;;  %s978_s4 = inlined_call_operand.vmem [shape: f32[4,64,32], index: 4, kind: input, shape index: {}]   ;;  %s979_s5 = inlined_call_operand.vmem [shape: f32[64,32], index: 5, kind: output, shape index: {}]  }
   0x1   :  { %s10_s20 = sshll.u32 %s974_s0, 4  ;;  %s11_s20 = int_to_ptr.vmem [resolvable:$true] %s10_s20 }
   0x2   :  { %s816_s21 = scalar_lea.vmem %s11_s20, 16  ;;  %p821_p1 = scmp.lt.s32.totalorder %s11_s20, %s11_s20 }
   0x3   :  { %p817_p0 = scmp.ne.s32.totalorder %s11_s20, %s816_s21  ;;  %p822_p2 = scmp.lt.s32.totalorder %s816_s21, %s816_s21 }
   0x5   :  { %p823_p3 = por %p822_p2, %p821_p1 }
   0x7   :  { %p824_p4 = pnand %p823_p3, %p817_p0 }
   0x9   :  { %827 = shalt.err (!%p824_p4)  }
   0xa   :  { %s854_s22 = smov [#allocation4]  }
   0xb   :  { %13 = dma.vmem_to_smem %s11_s20, 16, %s854_s22, [#allocation3] }
   0xc   :  { %840 = dma.done.wait [#allocation3], 16 }
   0xd   :  { %841 = vsyncadd [#allocation3], 4294967280 }
   0xe   :  { %15 = sfence }
   0xf   :  { %s890_s23 = smov 0   ;;  %s892_s24 = smov 0  }
  0x10   :  { %s894_s25 = smov 0  }
  0x11 LB: > { %s33_s0 = sadd.s32 1, %s848_s24  ;;  %p707_p5 = scmp.ge.s32.totalorder %s852_s25, 1  ;;  %s852_s25 = sphi %s894_s25, %s21_s25   ;;  %s848_s24 = sphi %s892_s24, %s981_s24   ;;  %s844_s23 = sphi %s890_s23, %s980_s23  }
  0x12   : > { %p35_p6 = scmp.ge.s32.totalorder %s33_s0, 8  ;;  %p239_p7 = scmp.lt.s32.totalorder %s852_s25, 9 }
  0x14   : > { %s983_s0 = smov (%p35_p6, %s33_s0), 0  ;;  %p240_p8 = pnand %p707_p5, %p239_p7 }
  0x15   : > { %s295_s26 = sld [smem:[#allocation4 + %s844_s23]] (!%p240_p8)  ;;  %p291_p9 = scmp.lt.s32.totalorder (!%p240_p8), %s844_s23, 7 }
  0x16   : > { %243 = sbr.rel (%p240_p8) target bundleno = 474 (0x1da), region = 36  ;;  %s305_s27 = sld [smem:[#allocation4 + %s844_s23]] (!%p240_p8) }
  0x17   : > { %s315_s16 = sld [smem:[#allocation4 + %s844_s23]] (!%p240_p8) }
  0x1b   : > { %vm335_vm0 = vcmask 261120   ;;  %v855_v0 = vmov 0.0   ;;  %vm856_vm1 = vmmov 0   ;;  %s922_s28 = scalar_select %p291_p9, %s844_s23, 7  ;;  %vm507_vm2 = vcmask 523264  }
  0x1c   : > { %744 = vmatprep.subr.mxu1 %v855_v0  ;;  %752 = vmatprep.mubr.msk.f32.mxu1 %vm856_vm1, %v855_v0  ;;  %336 = vst.msk [vmem:[#allocation2] sm:$0xff] %vm335_vm0, %v855_v0  ;;  %p296_p10 = scmp.lt.s32.totalorder %s295_s26, 3  ;;  %p306_p11 = scmp.lt.s32.totalorder %s305_s27, 3 }
  0x1d   : > { %766 = vmatprep.subr.mxu0 %v855_v0  ;;  %782 = vmatprep.mubr.msk.f32.mxu0 %vm856_vm1, %v855_v0  ;;  %s708_s8 = sshll.u32 %s922_s28, 3  ;;  %p317_p12 = scmp.lt.s32.totalorder %s315_s16, 3 }
  0x1e   : > { %s985_s26 = smov (!%p296_p10, %s295_s26), 3  ;;  %s987_s27 = smov (!%p306_p11, %s305_s27), 3 }
  0x1f   : > { %s722_s29 = sshll.u32 %s985_s26, 5  ;;  %s723_s9 = sshll.u32 %s987_s27, 5 }
  0x20   : > { %s303_s7 = scalar_lea.vmem %s976_s2, %s722_s29  ;;  %s294_s12 = scalar_lea.vmem %s975_s1, %s708_s8 }
  0x21   : > { %v341_v1 = vld [vmem:[%s303_s7 + $0x18] sm:$0xff]  ;;  %v340_v2 = vld [vmem:[%s303_s7 + $0x10] sm:$0xff]  ;;  %v339_v3 = vld [vmem:[%s303_s7 + $0x8] sm:$0xff]  ;;  %s313_s15 = scalar_lea.vmem %s977_s3, %s723_s9  ;;  %s989_s16 = smov (!%p317_p12, %s315_s16), 3 }
  0x22   : > { %745 = vmatpush3.msra.mxu1 %v341_v1  ;;  %v338_v4 = vld [vmem:[%s303_s7] sm:$0xff]  ;;  %v345_v6 = vld [vmem:[%s313_s15 + $0x18] sm:$0xff]  ;;  %v344_v7 = vld [vmem:[%s313_s15 + $0x10] sm:$0xff]  ;;  %s724_s17 = sshll.u32 %s989_s16, 6  ;;  %s330_s23 = scalar_lea.vmem %s979_s5, %s708_s8 }
  0x23   : > { %746 = vmatprep.subr.mxu1 %v855_v0  ;;  %v337_v5 = vld [vmem:[%s294_s12] sm:$0xff]  ;;  %v343_v8 = vld [vmem:[%s313_s15 + $0x8] sm:$0xff]  ;;  %s324_s20 = scalar_lea.vmem %s978_s4, %s724_s17 }
  0x24   : > { %747 = vmatpush3.msra.mxu1 %v340_v2  ;;  %v342_v9 = vld [vmem:[%s313_s15] sm:$0xff]  ;;  %v353_v10 = vld [vmem:[%s324_s20 + $0x38] sm:$0xff]  ;;  %v352_v11 = vld [vmem:[%s324_s20 + $0x30] sm:$0xff] }
  0x25   : > { %748 = vmatprep.subr.mxu1 %v855_v0  ;;  %767 = vmatpush3.msra.mxu0 %v353_v10  ;;  %v351_v12 = vld [vmem:[%s324_s20 + $0x28] sm:$0xff]  ;;  %v350_v13 = vld [vmem:[%s324_s20 + $0x20] sm:$0xff]  ;;  %v349_v14 = vld [vmem:[%s324_s20 + $0x18] sm:$0xff] }
  0x26   : > { %749 = vmatpush3.msra.mxu1 %v339_v3  ;;  %768 = vmatprep.subr.mxu0 %v855_v0  ;;  %v348_v15 = vld [vmem:[%s324_s20 + $0x10] sm:$0xff]  ;;  %v347_v16 = vld [vmem:[%s324_s20 + $0x8] sm:$0xff]  ;;  %v346_v17 = vld [vmem:[%s324_s20] sm:$0xff] }
  0x27   : > { %750 = vmatprep.subr.mxu1 %v855_v0  ;;  %769 = vmatpush3.msra.mxu0 %v352_v11  ;;  %v505_v28 = vld [vmem:[#allocation2] sm:$0xff] }
  0x28   : > { %751 = vmatpush3.msra.mxu1 %v338_v4  ;;  %770 = vmatprep.subr.mxu0 %v855_v0 }
  0x29   : > { %753 = vmatmul.mubr.msk.f32.vlgmr.msra.gmra.mxu1 %vm335_vm0, %v337_v5  ;;  %755 = vmatprep.subr.mxu1 %v855_v0 }
  0x2a   : > { %756 = vmatpush3.msra.mxu1 %v345_v6  ;;  %763 = vmatprep.mubr.msk.f32.mxu1 %vm856_vm1, %v855_v0 }
  0x2b   : > { %757 = vmatprep.subr.mxu1 %v855_v0  ;;  %771 = vmatpush3.msra.mxu0 %v351_v12 }
  0x2c   : > { %758 = vmatpush3.msra.mxu1 %v344_v7  ;;  %772 = vmatprep.subr.mxu0 %v855_v0 }
  0x2d   : > { %759 = vmatprep.subr.mxu1 %v855_v0  ;;  %773 = vmatpush3.msra.mxu0 %v350_v13 }
  0x2e   : > { %760 = vmatpush3.msra.mxu1 %v343_v8  ;;  %774 = vmatprep.subr.mxu0 %v855_v0 }
  0x2f   : > { %761 = vmatprep.subr.mxu1 %v855_v0  ;;  %775 = vmatpush3.msra.mxu0 %v349_v14 }
  0x30   : > { %762 = vmatpush3.msra.mxu1 %v342_v9  ;;  %776 = vmatprep.subr.mxu0 %v855_v0 }
  0x31   : > { %764 = vmatmul.mubr.msk.f32.vlgmr.msra.gmra.mxu1 %vm335_vm0, %v337_v5  ;;  %777 = vmatpush3.msra.mxu0 %v348_v15 }
  0x32   : > { %778 = vmatprep.subr.mxu0 %v855_v0 }
  0x33   : > { %779 = vmatpush3.msra.mxu0 %v347_v16 }
  0x34   : > { %780 = vmatprep.subr.mxu0 %v855_v0 }
  0x35   : > { %781 = vmatpush3.msra.mxu0 %v346_v17 }
  0xe9   : > { %v424_v18 = vpop.f32.mrf.mxu1 }
  0xea   : > { %v717_v19 = vmul.f32 -1.442695, %v424_v18 }
  0xeb   : > { %v754_v20 = vpop.f32.mrf.mxu1 }
  0xec   : > { %812 = vpow2.f32 %v717_v19 }
  0xf1   : > { %v501_v21 = vpop.f32.mrf.mxu1 }
  0xf3   : > { %v765_v22 = vpop.f32.mrf.mxu1 }
  0xf9   : > { %v813_v23 = vpop.eup %812 }
  0xfa   : > { %v431_v24 = vadd.f32 1.0, %v813_v23 }
  0xfc   : > { %814 = vrcp.f32 %v431_v24 }
 0x109   : > { %v815_v25 = vpop.eup %814 }
 0x10a   : > { %v434_v26 = vmul.f32 %v815_v25, %v424_v18 }
 0x10c   : > { %v506_v27 = vmul.f32 %v501_v21, %v434_v26 }
 0x10e   : > { %783 = vmatmul.mubr.msk.f32.vlgmr.msra.gmra.mxu0 %vm507_vm2, %v506_v27 }
 0x1ce   : > { %v577_v29 = vpop.f32.mrf.mxu0 }
 0x1cf   : > { %v581_v30 = vadd.f32 %v577_v29, %v505_v28 }
 0x1d0   : > { %v784_v31 = vpop.f32.mrf.mxu0 }
 0x1d1   : > { %582 = vst.msk [vmem:[#allocation2] sm:$0xff] %vm335_vm0, %v581_v30 }
 0x1d8   : > { %v586_v32 = vld [vmem:[#allocation2] sm:$0xff] }
 0x1d9   : > { %587 = vst.msk [vmem:[%s330_s23] sm:$0xff] %vm335_vm0, %v586_v32 }
 0x1da PF: > { %s21_s25 = sadd.s32 1, %s852_s25   ;;  %s980_s23 = smov %s848_s24 }
 0x1db   : > { %p18_p13 = scmp.ge.s32.totalorder %s21_s25, 10   ;;  %s981_s24 = smov %s983_s0 }
 0x1dd   :  { %20 = sbr.rel (!%p18_p13) target bundleno = 17 (0x11), region = 83 }

</bundles_post_ra>
